<compile_context>
chip_gen: v7x
topology: tpu7x:2x2x1
jax: 0.10.0
libtpu: 0.0.40
codegen_flags: <defaults>
</compile_context>

<pallas_src>
import jax
import jax.numpy as jnp
from jax import lax
from jax.experimental import pallas as pl
from jax.experimental.pallas import tpu as pltpu


# ----------------------------------------------------------------------------- kernels


def _encode_decode_partial(x_ref, wencT_ref, bias_ref, wdec_ref):
    """One (row-tile, d_sae-chunk) step: encoder matmul + JumpReLU + decoder partial."""
    # Encoder: x (tm, d_model) contracted with W_enc^T (tsae, d_model) over d_model.
    pre = lax.dot_general(
        x_ref[...], wencT_ref[...],
        dimension_numbers=(((1,), (1,)), ((), ())),
        preferred_element_type=jnp.float32)            # (tm, tsae) f32
    b = bias_ref[...]                                  # (2, tsae) f32: [folded b_enc; threshold]
    pre = pre + b[0:1, :]
    # JumpReLU: (pre > threshold) * relu(pre)  -- exact PyTorch semantics
    # (keep the max so negative thresholds stay correct).
    acts = jnp.where(pre > b[1:2, :], jnp.maximum(pre, 0.0), 0.0)
    # Decoder partial product for this d_sae chunk (bf16 operands, f32 accumulation).
    return jnp.dot(acts.astype(wdec_ref.dtype), wdec_ref[...],
                   preferred_element_type=jnp.float32)


def _hsae_kernel_f32(x_ref, wencT_ref, bias_ref, bdec_ref, wdec_ref, out_ref):
    """float32 output: accumulate directly into the resident output block (no scratch)."""
    j = pl.program_id(1)

    @pl.when(j == 0)
    def _():
        out_ref[...] = jnp.zeros_like(out_ref)

    out_ref[...] += _encode_decode_partial(x_ref, wencT_ref, bias_ref, wdec_ref)

    @pl.when(j == pl.num_programs(1) - 1)
    def _():
        out_ref[...] += bdec_ref[...]


def _hsae_kernel_scratch(x_ref, wencT_ref, bias_ref, bdec_ref, wdec_ref, out_ref, acc_ref):
    """Non-f32 output: f32 VMEM accumulator, bias-add + cast on the final d_sae chunk."""
    j = pl.program_id(1)

    @pl.when(j == 0)
    def _():
        acc_ref[...] = jnp.zeros_like(acc_ref)

    acc_ref[...] += _encode_decode_partial(x_ref, wencT_ref, bias_ref, wdec_ref)

    @pl.when(j == pl.num_programs(1) - 1)
    def _():
        out_ref[...] = (acc_ref[...] + bdec_ref[...]).astype(out_ref.dtype)


# ----------------------------------------------------------------------------- tiling


def _round_up(v, m):
    return (v + m - 1) // m * m


def _tpu_generation():
    kind = ""
    try:
        kind = jax.devices()[0].device_kind.lower()
    except Exception:
        pass
    if "v5 lite" in kind or "v5lite" in kind or "v5e" in kind:
        return "v5e"
    if "v7" in kind:
        return "v7x"
    if "v6" in kind:
        return "v6e"
    return "unknown"


def _vmem_capacity_bytes():
    try:
        return int(pltpu.get_tpu_info().vmem_capacity_bytes)
    except Exception:
        return 64 << 20


def _plan_tiles(d_model, d_sae, *, generation, vmem_budget, out_itemsize=4):
    """Pick (tm, tsae): largest tm past the generation's weight-stream roofline knee
    (intensity ~ tm FLOP/byte), tsae = full d_sae if resident weights fit, otherwise the
    largest 256-aligned (128 on v5e) chunk whose per-step working set fits the budget."""
    if generation == "v5e":
        tm_target, tsae_floor = 256, 128           # knee ~240 FLOP/B; 4x128^2 MXU is fine at 128
    elif generation == "v7x":
        tm_target, tsae_floor = 512, 256           # 64 MiB VMEM, 2 TCs share HBM, 2x256^2 MXU
    elif generation == "v6e":
        tm_target, tsae_floor = 1024, 256          # knee ~680 FLOP/B, 128 MiB VMEM
    else:
        tm_target = 512 if vmem_budget <= (48 << 20) else 1024
        tsae_floor = 256

    bf16, f32 = 2, 4

    def per_step(tm, ts):
        return (2 * tm * d_model * bf16                    # x tile (double-buffered)
                + 2 * 2 * ts * d_model * bf16              # W_enc^T + W_dec chunks (dbl-buf)
                + 2 * 8 * ts * f32                         # (2, ts) biases, sublane-padded to 8
                + 2 * 8 * d_model * f32                    # b_dec
                + 2 * tm * d_model * out_itemsize          # output tile (dbl-buf)
                + tm * d_model * f32                       # accumulator (scratch or resident out)
                + 2 * tm * ts * f32                        # pre / acts f32 intermediates
                + tm * ts * bf16)                          # bf16 acts copy fed to the decoder MXU

    tm = tm_target
    while True:
        if per_step(tm, d_sae) <= vmem_budget:
            return tm, d_sae                               # full d_sae resident -> grid[1] == 1
        ts = 2048
        while ts >= tsae_floor:
            if ts < d_sae and per_step(tm, ts) <= vmem_budget:
                return tm, ts
            ts //= 2
        if tm <= 256:
            return tm, tsae_floor
        tm //= 2


# ----------------------------------------------------------------------------- prepare (one-time)


def prepare_hsae(params, *, compute_dtype=jnp.bfloat16):
    """One-time preparation outside the hot path: fold the pre-encoder bias into b_enc,
    cast weights to the MXU dtype, pre-transpose W_enc to (d_sae, d_model), stack
    b_enc/threshold, pad d_sae to the chunk size, and pick a generation-aware tile plan."""
    f32 = jnp.float32
    W_enc = jnp.asarray(params["W_enc"], f32)              # (d_model, d_sae)
    W_dec = jnp.asarray(params["W_dec"], f32)              # (d_sae, d_model)
    d_model, d_sae = W_enc.shape

    generation = _tpu_generation()
    vmem_cap = _vmem_capacity_bytes()
    vmem_budget = min(vmem_cap * 3 // 4, vmem_cap - (16 << 20))   # 96 MiB on 128, 48 MiB on 64

    tm, tsae = _plan_tiles(d_model, d_sae, generation=generation, vmem_budget=vmem_budget)
    d_sae_pad = d_sae if tsae == d_sae else _round_up(d_sae, tsae)

    #   (x - b_dec) @ W_enc + b_enc  ==  x @ W_enc + (b_enc - b_dec @ W_enc)
    b_enc_adj = jnp.asarray(params["b_enc"], f32) - jnp.asarray(params["b_dec"], f32) @ W_enc
    thr = jnp.asarray(params["threshold"], f32)

    W_encT_c = W_enc.T.astype(compute_dtype)               # (d_sae, d_model): contiguous chunk DMA
    W_dec_c = W_dec.astype(compute_dtype)                  # (d_sae, d_model)

    if d_sae_pad != d_sae:
        # Zero padding is inert: pre = 0, threshold = 0, 0 > 0 is False -> acts = 0.
        pad = d_sae_pad - d_sae
        W_encT_c = jnp.pad(W_encT_c, ((0, pad), (0, 0)))
        W_dec_c = jnp.pad(W_dec_c, ((0, pad), (0, 0)))
        b_enc_adj = jnp.pad(b_enc_adj, ((0, pad),))
        thr = jnp.pad(thr, ((0, pad),))

    return {
        "W_encT": W_encT_c,
        "W_dec": W_dec_c,
        "biases": jnp.stack([b_enc_adj, thr], axis=0),     # (2, d_sae_pad): b_enc_adj / threshold
        "b_dec": jnp.asarray(params["b_dec"], f32).reshape(1, d_model),
        "d_model": d_model, "d_sae": d_sae, "d_sae_pad": d_sae_pad,
        "tm": tm, "tsae": tsae,
        "generation": generation, "vmem_budget": vmem_budget, "vmem_cap": vmem_cap,
        "compute_dtype": compute_dtype,
    }


# ----------------------------------------------------------------------------- forward (hot path)


def hsae_forward(x, prepared):
    """x: [N, d_model]. Returns recon: [N, d_model] in x.dtype. `prepared` from prepare_hsae."""
    N, d_model = x.shape
    assert d_model == prepared["d_model"]
    d_sae_pad, tsae = prepared["d_sae_pad"], prepared["tsae"]
    compute_dtype = prepared["compute_dtype"]

    n_r = _round_up(N, 8)
    tm_eff = min(prepared["tm"], n_r)
    # v7x: row axis is "parallel" over 2 TensorCores; guarantee >= 2 row tiles when N allows.
    if prepared["generation"] == "v7x" and n_r >= 512 and tm_eff >= n_r:
        tm_eff = _round_up((n_r + 1) // 2, 128)

    N_pad = _round_up(N, tm_eff)
    x_c = x.astype(compute_dtype)
    if N_pad != N:
        x_c = jnp.pad(x_c, ((0, N_pad - N), (0, 0)))

    grid = (N_pad // tm_eff, d_sae_pad // tsae)
    out_is_f32 = (x.dtype == jnp.float32)
    kernel = _hsae_kernel_f32 if out_is_f32 else _hsae_kernel_scratch
    scratch = [] if out_is_f32 else [pltpu.VMEM((tm_eff, d_model), jnp.float32)]

    w_itemsize = prepared["W_encT"].dtype.itemsize
    weight_bytes = (prepared["W_encT"].size + prepared["W_dec"].size) * w_itemsize
    restream = grid[0] if grid[1] > 1 else 1               # weights re-streamed per row tile
    cost = pl.CostEstimate(
        flops=4 * N_pad * d_model * d_sae_pad,             # two matmuls
        transcendentals=0,
        bytes_accessed=int(x_c.size * x_c.dtype.itemsize
                           + N_pad * d_model * x.dtype.itemsize
                           + weight_bytes * restream
                           + prepared["biases"].size * 4 + d_model * 4),
    )

    vmem_limit = int(min(prepared["vmem_cap"], prepared["vmem_budget"] + (8 << 20)))

    out = pl.pallas_call(
        kernel,
        out_shape=jax.ShapeDtypeStruct((N_pad, d_model), x.dtype),
        grid_spec=pltpu.PrefetchScalarGridSpec(
            num_scalar_prefetch=0,
            grid=grid,
            in_specs=[
                pl.BlockSpec((tm_eff, d_model), lambda i, j: (i, 0)),   # x row tile
                pl.BlockSpec((tsae, d_model), lambda i, j: (j, 0)),     # W_enc^T chunk (contiguous)
                pl.BlockSpec((2, tsae), lambda i, j: (0, j)),           # folded b_enc + threshold
                pl.BlockSpec((1, d_model), lambda i, j: (0, 0)),        # b_dec
                pl.BlockSpec((tsae, d_model), lambda i, j: (j, 0)),     # W_dec chunk (contiguous)
            ],
            out_specs=pl.BlockSpec((tm_eff, d_model), lambda i, j: (i, 0)),
            scratch_shapes=scratch,
        ),
        compiler_params=pltpu.CompilerParams(
            dimension_semantics=("parallel", "arbitrary"),
            vmem_limit_bytes=vmem_limit,
        ),
        cost_estimate=cost,
    )(x_c, prepared["W_encT"], prepared["biases"], prepared["b_dec"], prepared["W_dec"])

    return out[:N] if N_pad != N else out


# ----------------------------------------------------------------------------- references


def hsae_forward_ref(x, params):
    """Pure-JAX f32 reference matching the PyTorch forward exactly."""
    pre = (x - params["b_dec"]) @ params["W_enc"] + params["b_enc"]
    acts = (pre > params["threshold"]) * jax.nn.relu(pre)
    return acts @ params["W_dec"] + params["b_dec"]


def hsae_forward_emulated(x, params, compute_dtype=jnp.bfloat16):
    """Plain-JAX emulation of the kernel's mixed-precision math (for tight checking)."""
    f32 = jnp.float32
    W_enc, W_dec = params["W_enc"], params["W_dec"]
    b_enc_adj = params["b_enc"].astype(f32) - params["b_dec"].astype(f32) @ W_enc.astype(f32)
    pre = jnp.dot(x.astype(compute_dtype), W_enc.astype(compute_dtype),
                  preferred_element_type=f32) + b_enc_adj
    acts = jnp.where(pre > params["threshold"].astype(f32), jnp.maximum(pre, 0.0), 0.0)
    return jnp.dot(acts.astype(compute_dtype), W_dec.astype(compute_dtype),
                   preferred_element_type=f32) + params["b_dec"].astype(f32)


def make_params(key, d_model, d_sae, d_sae_h):
    """Deterministic synthetic parameters with the same shapes as HSae.__init__."""
    ks = jax.random.split(key, 10)
    scale = 0.1
    return {
        "W_enc": scale * jax.random.normal(ks[0], (d_model, d_sae), jnp.float32),
        "W_dec": scale * jax.random.normal(ks[1], (d_sae, d_model), jnp.float32),
        "threshold": 0.05 * jnp.abs(jax.random.normal(ks[2], (d_sae,), jnp.float32)),
        "b_enc": scale * jax.random.normal(ks[3], (d_sae,), jnp.float32),
        "b_dec": scale * jax.random.normal(ks[4], (d_model,), jnp.float32),
        # Hierarchical params (unused by forward, kept for shape fidelity):
        "W_enc_h": scale * jax.random.normal(ks[5], (d_model, d_sae_h), jnp.float32),
        "W_dec_h": scale * jax.random.normal(ks[6], (d_sae_h, d_model), jnp.float32),
        "threshold_h": 0.05 * jnp.abs(jax.random.normal(ks[7], (d_sae_h,), jnp.float32)),
        "b_enc_h": scale * jax.random.normal(ks[8], (d_sae_h,), jnp.float32),
        "b_dec_h": scale * jax.random.normal(ks[9], (d_model,), jnp.float32),
    }


if __name__ == "__main__":
    key = jax.random.PRNGKey(0)
    d_model, d_sae, d_sae_h = 32, 64, 48
    batch, seq = 2, 8
    N = batch * seq

    kx, kp = jax.random.split(key)
    params = make_params(kp, d_model, d_sae, d_sae_h)
    x = jax.random.normal(kx, (N, d_model), jnp.float32)

    prepared = prepare_hsae(params)                   # one-time weight prep, outside the hot path
    recon = jax.block_until_ready(hsae_forward(x, prepared))
    assert recon.shape == (N, d_model)

    # Tight check against an emulation of the kernel's exact mixed-precision math.
    emu = hsae_forward_emulated(x, params)
    assert jnp.allclose(recon, emu, atol=5e-3, rtol=5e-3), "mismatch vs bf16-matched reference"

    # Looser check against the full-f32 PyTorch-equivalent reference (bf16 MXU operands).
    ref = hsae_forward_ref(x, params)
    assert jnp.allclose(recon, ref, atol=5e-2, rtol=5e-2), "mismatch vs f32 reference"

    print("KERNEL_OK")
</pallas_src>

<mosaic_0001>
module attributes {stable_mosaic.version = 11 : i64} {
  func.func @_hsae_kernel_f32(%arg0: i32, %arg1: i32, %arg2: memref<16x32xbf16, #tpu.memory_space<vmem>>, %arg3: memref<64x32xbf16, #tpu.memory_space<vmem>>, %arg4: memref<2x64xf32, #tpu.memory_space<vmem>>, %arg5: memref<1x32xf32, #tpu.memory_space<vmem>>, %arg6: memref<64x32xbf16, #tpu.memory_space<vmem>>, %arg7: memref<16x32xf32, #tpu.memory_space<vmem>>) attributes {dimension_semantics = [#tpu.dimension_semantics<parallel>, #tpu.dimension_semantics<arbitrary>], iteration_bounds = array<i64: 1, 1>, scalar_prefetch = 0 : i64, scratch_operands = 0 : i64, tpu.core_type = #tpu.core_type<tc>, window_params = [{transform_indices = @transform_0, window_bounds = array<i64: 16, 32>}, {transform_indices = @transform_1, window_bounds = array<i64: 64, 32>}, {transform_indices = @transform_2, window_bounds = array<i64: 2, 64>}, {pipeline_mode = #tpu.pipeline_mode<synchronous>, transform_indices = @transform_3, window_bounds = array<i64: 1, 32>}, {transform_indices = @transform_4, window_bounds = array<i64: 64, 32>}, {transform_indices = @transform_5, window_bounds = array<i64: 16, 32>}]} {
    %c0_i32 = arith.constant 0 : i32
    %0 = arith.cmpi eq, %arg1, %c0_i32 : i32
    %1 = arith.extui %0 : i1 to i32
    %c0_i32_0 = arith.constant 0 : i32
    %2 = arith.cmpi ne, %1, %c0_i32_0 : i32
    scf.if %2 {
      %cst_17 = arith.constant 0.000000e+00 : f32
      %26 = vector.broadcast %cst_17 : f32 to vector<16x32xf32>
      %c0_18 = arith.constant 0 : index
      %c0_19 = arith.constant 0 : index
      %27 = vector.load %arg7[%c0_18, %c0_19] : memref<16x32xf32, #tpu.memory_space<vmem>>, vector<16x32xf32>
      tpu.vector_store %arg7[%c0_18, %c0_19], %26 {strides = array<i32>} : memref<16x32xf32, #tpu.memory_space<vmem>>, vector<16x32xf32>,
    } else {
    }
    %c0 = arith.constant 0 : index
    %c0_1 = arith.constant 0 : index
    %3 = vector.load %arg7[%c0, %c0_1] : memref<16x32xf32, #tpu.memory_space<vmem>>, vector<16x32xf32>
    %c0_2 = arith.constant 0 : index
    %c0_3 = arith.constant 0 : index
    %4 = vector.load %arg2[%c0_2, %c0_3] : memref<16x32xbf16, #tpu.memory_space<vmem>>, vector<16x32xbf16>
    %c0_4 = arith.constant 0 : index
    %c0_5 = arith.constant 0 : index
    %5 = vector.load %arg3[%c0_4, %c0_5] : memref<64x32xbf16, #tpu.memory_space<vmem>>, vector<64x32xbf16>
    %cst = arith.constant dense<0.000000e+00> : vector<16x64xf32>
    %6 = tpu.matmul %4, %5, %cst {dimension_numbers = #tpu.dot_dimension_numbers<[1], [1], [0], [0], [0, 0, 1, 0], [], []>} : vector<16x32xbf16>, vector<64x32xbf16>, vector<16x64xf32> -> vector<16x64xf32>
    %c0_6 = arith.constant 0 : index
    %c0_7 = arith.constant 0 : index
    %7 = vector.load %arg4[%c0_6, %c0_7] : memref<2x64xf32, #tpu.memory_space<vmem>>, vector<2x64xf32>
    %8 = vector.extract_strided_slice %7 {offsets = [0, 0], sizes = [1, 64], strides = [1, 1]} : vector<2x64xf32> to vector<1x64xf32>
    %9 = vector.broadcast %8 : vector<1x64xf32> to vector<16x64xf32>
    %10 = arith.addf %6, %9 : vector<16x64xf32>
    %11 = vector.extract_strided_slice %7 {offsets = [1, 0], sizes = [1, 64], strides = [1, 1]} : vector<2x64xf32> to vector<1x64xf32>
    %12 = vector.broadcast %11 : vector<1x64xf32> to vector<16x64xf32>
    %13 = arith.cmpf ogt, %10, %12 : vector<16x64xf32>
    %cst_8 = arith.constant 0.000000e+00 : f32
    %14 = vector.broadcast %cst_8 : f32 to vector<16x64xf32>
    %15 = arith.maximumf %10, %14 : vector<16x64xf32>
    %cst_9 = arith.constant 0.000000e+00 : f32
    %16 = vector.broadcast %cst_9 : f32 to vector<16x64xf32>
    %17 = arith.select %13, %15, %16 : vector<16x64xi1>, vector<16x64xf32>
    %18 = arith.truncf %17 : vector<16x64xf32> to vector<16x64xbf16>
    %c0_10 = arith.constant 0 : index
    %c0_11 = arith.constant 0 : index
    %19 = vector.load %arg6[%c0_10, %c0_11] : memref<64x32xbf16, #tpu.memory_space<vmem>>, vector<64x32xbf16>
    %cst_12 = arith.constant dense<0.000000e+00> : vector<16x32xf32>
    %20 = tpu.matmul %18, %19, %cst_12 {dimension_numbers = #tpu.dot_dimension_numbers<[1], [0], [0], [1], [0, 0, 1, 1], [], []>} : vector<16x64xbf16>, vector<64x32xbf16>, vector<16x32xf32> -> vector<16x32xf32>
    %21 = arith.addf %3, %20 : vector<16x32xf32>
    %c0_13 = arith.constant 0 : index
    %c0_14 = arith.constant 0 : index
    %22 = vector.load %arg7[%c0_13, %c0_14] : memref<16x32xf32, #tpu.memory_space<vmem>>, vector<16x32xf32>
    tpu.vector_store %arg7[%c0_13, %c0_14], %21 {strides = array<i32>} : memref<16x32xf32, #tpu.memory_space<vmem>>, vector<16x32xf32>,
    %c0_i32_15 = arith.constant 0 : i32
    %23 = arith.cmpi eq, %arg1, %c0_i32_15 : i32
    %24 = arith.extui %23 : i1 to i32
    %c0_i32_16 = arith.constant 0 : i32
    %25 = arith.cmpi ne, %24, %c0_i32_16 : i32
    scf.if %25 {
      %c0_17 = arith.constant 0 : index
      %c0_18 = arith.constant 0 : index
      %26 = vector.load %arg7[%c0_17, %c0_18] : memref<16x32xf32, #tpu.memory_space<vmem>>, vector<16x32xf32>
      %c0_19 = arith.constant 0 : index
      %c0_20 = arith.constant 0 : index
      %27 = vector.load %arg5[%c0_19, %c0_20] : memref<1x32xf32, #tpu.memory_space<vmem>>, vector<1x32xf32>
      %28 = vector.broadcast %27 : vector<1x32xf32> to vector<16x32xf32>
      %29 = arith.addf %26, %28 : vector<16x32xf32>
      %c0_21 = arith.constant 0 : index
      %c0_22 = arith.constant 0 : index
      %30 = vector.load %arg7[%c0_21, %c0_22] : memref<16x32xf32, #tpu.memory_space<vmem>>, vector<16x32xf32>
      tpu.vector_store %arg7[%c0_21, %c0_22], %29 {strides = array<i32>} : memref<16x32xf32, #tpu.memory_space<vmem>>, vector<16x32xf32>,
    } else {
    }
    return
  }
  func.func @transform_0(%arg0: i32, %arg1: i32) -> (i32, i32) {
    %c0_i32 = arith.constant 0 : i32
    %c0_i32_0 = arith.constant 0 : i32
    return %arg0, %c0_i32 : i32, i32
  }
  func.func @transform_1(%arg0: i32, %arg1: i32) -> (i32, i32) {
    %c0_i32 = arith.constant 0 : i32
    %c0_i32_0 = arith.constant 0 : i32
    return %arg1, %c0_i32 : i32, i32
  }
  func.func @transform_2(%arg0: i32, %arg1: i32) -> (i32, i32) {
    %c0_i32 = arith.constant 0 : i32
    %c0_i32_0 = arith.constant 0 : i32
    return %c0_i32, %arg1 : i32, i32
  }
  func.func @transform_3(%arg0: i32, %arg1: i32) -> (i32, i32) {
    %c0_i32 = arith.constant 0 : i32
    %c0_i32_0 = arith.constant 0 : i32
    %c0_i32_1 = arith.constant 0 : i32
    return %c0_i32, %c0_i32_0 : i32, i32
  }
  func.func @transform_4(%arg0: i32, %arg1: i32) -> (i32, i32) {
    %c0_i32 = arith.constant 0 : i32
    %c0_i32_0 = arith.constant 0 : i32
    return %arg1, %c0_i32 : i32, i32
  }
  func.func @transform_5(%arg0: i32, %arg1: i32) -> (i32, i32) {
    %c0_i32 = arith.constant 0 : i32
    %c0_i32_0 = arith.constant 0 : i32
    return %arg0, %c0_i32 : i32, i32
  }
}

</mosaic_0001>

<bundles_post_ra>
// kernel: tpu_custom_call.1
= control target key start
LH: loop header
LB: loop body
LE: loop exit
PB: predicated region body
PF: predicated region fallthrough
CT: control target
= control target key end

     0   :  { %vm26_vm0 = vcmask 261120   ;;  %v336_v0 = vmov 0.0   ;;  %vm337_vm1 = vmmov 0   ;;  %s427_s0 = inlined_call_operand.vmem [shape: bf16[16,32], index: 0, kind: input, shape index: {}]   ;;  %s428_s1 = inlined_call_operand.vmem [shape: bf16[64,32], index: 1, kind: input, shape index: {}]   ;;  %s429_s2 = inlined_call_operand.vmem [shape: f32[2,64], index: 2, kind: input, shape index: {}]   ;;  %s430_s3 = inlined_call_operand.vmem [shape: f32[1,32], index: 3, kind: input, shape index: {}]   ;;  %s431_s4 = inlined_call_operand.vmem [shape: bf16[64,32], index: 4, kind: input, shape index: {}]   ;;  %s432_s5 = inlined_call_operand.hbm [shape: f32[16,32], index: 5, kind: output, shape index: {}]  }
   0x1   :  { %274 = vmatprep.subr.bf16.mxu0 %v336_v0  ;;  %v303_v1 = vld [vmem:[%s428_s1] sm:$0xff]   ;;  %27 = vst.msk [vmem:[#allocation2] sm:$0xff] %vm26_vm0, %v336_v0  ;;  %28 = vst.msk [vmem:[#allocation2 + $0x8] sm:$0xff] %vm26_vm0, %v336_v0  ;;  %286 = vmatprep.subr.bf16.mxu1 %v336_v0  ;;  %v304_v3 = vld [vmem:[%s428_s1 + $0x8] sm:$0xff]  }
   0x2   :  { %282 = vmatprep.mubr.msk.bf16.mxu0 %vm337_vm1, %v336_v0  ;;  %294 = vmatprep.mubr.msk.bf16.mxu1 %vm337_vm1, %v336_v0  ;;  %v76_v2 = vsel %vm26_vm0, %v303_v1, 0  ;;  %v308_v4 = vld [vmem:[%s431_s4] sm:$0xff]   ;;  %v309_v5 = vld [vmem:[%s431_s4 + $0x8] sm:$0xff]   ;;  %v79_v6 = vsel %vm26_vm0, %v304_v3, 0 }
   0x3   :  { %275 = vmatpush3.bf16.xpose.msra.mxu0 %v76_v2  ;;  %287 = vmatpush3.bf16.msra.mxu1 %v308_v4 }
   0x4   :  { %276 = vmatprep.subr.bf16.mxu0 %v336_v0  ;;  %288 = vmatprep.subr.bf16.mxu1 %v336_v0 }
   0x5   :  { %10 = vsyncpa [#allocation3], 0  ;;  %v305_v7 = vld [vmem:[%s428_s1 + $0x10] sm:$0xff]   ;;  %v306_v9 = vld [vmem:[%s428_s1 + $0x18] sm:$0xff]   ;;  %v42_v14 = vlaneseq  ;;  %vm171_vm4 = vcmask 523264  }
   0x6   :  { %v82_v8 = vsel %vm26_vm0, %v305_v7, 0  ;;  %v85_v10 = vsel %vm26_vm0, %v306_v9, 0  ;;  %v307_v11 = vld [vmem:[%s427_s0] sm:$0xff]   ;;  %v310_v12 = vld [vmem:[%s431_s4 + $0x10] sm:$0xff]   ;;  %v311_v13 = vld [vmem:[%s431_s4 + $0x18] sm:$0xff]   ;;  %s338_s4 = smov [#allocation2]  }
   0x7   :  { %289 = vmatpush3.bf16.msra.mxu1 %v309_v5  ;;  %v43_v15 = vshrl.u32 %v42_v14, 7  ;;  %v41_v17 = vld [vmem:[%s429_s2] sm:$0x3]  ;;  %s241_s12 = sshll.u32 %s338_s4, 4  ;;  %s242_s12 = int_to_ptr.vmem [resolvable:$true] %s241_s12 }
   0x8   :  { %290 = vmatprep.subr.bf16.mxu1 %v336_v0  ;;  %v29_v32 = vld [vmem:[#allocation2] sm:$0xff]  ;;  %v30_v34 = vld [vmem:[#allocation2 + $0x8] sm:$0xff]  ;;  %s312_s13 = scalar_lea.vmem %s242_s12, 256  ;;  %p317_p1 = scmp.lt.s32.totalorder %s242_s12, %s242_s12 }
   0x9   :  { %v44_v16 = vsub.s32 0, %v43_v15  ;;  %v130_v18 = vsub.s32 1, %v43_v15  ;;  %v263_v40 = vld [vmem:[%s430_s3] ss:$0 sm:$0xff]  ;;  %p313_p0 = scmp.ne.s32.totalorder %s242_s12, %s312_s13  ;;  %p318_p2 = scmp.lt.s32.totalorder %s312_s13, %s312_s13 }
   0xb   :  { %277 = vmatpush3.bf16.xpose.msra.mxu0 %v79_v6  ;;  %291 = vmatpush3.bf16.msra.mxu1 %v310_v12  ;;  %v45_v19 = vrot.slane %v41_v17, %v44_v16  ;;  %v131_v21 = vrot.slane %v41_v17, %v130_v18  ;;  %p319_p3 = por %p318_p2, %p317_p1 }
   0xc   :  { %278 = vmatprep.subr.bf16.mxu0 %v336_v0  ;;  %292 = vmatprep.subr.bf16.mxu1 %v336_v0 }
   0xd   :  { %p320_p4 = pnand %p319_p3, %p313_p0 }
   0xf   :  { %293 = vmatpush3.bf16.msra.mxu1 %v311_v13 }
  0x13   :  { %279 = vmatpush3.bf16.xpose.msra.mxu0 %v82_v8 }
  0x14   :  { %280 = vmatprep.subr.bf16.mxu0 %v336_v0 }
  0x1b   :  { %281 = vmatpush3.bf16.xpose.msra.mxu0 %v85_v10 }
  0x22   :  { %283 = vmatmul.mubr.msk.bf16.vlgmr.msra.gmra.mrb[0].mxu0 %vm26_vm0, %v307_v11 }
  0xf5   :  { %v121_v20 = vpop.f32.mrb[0].mxu0 }
  0xf6   :  { %v122_v22 = vadd.f32 %v121_v20, %v45_v19  ;;  %v284_v23 = vpop.f32.mrb[1].mxu0 }
  0xf7   :  { %v124_v24 = vpop.f32.mrb[2].mxu0 }
  0xf8   :  { %v134_v25 = vmax.f32 %v122_v22, 0.0  ;;  %v125_v26 = vadd.f32 %v124_v24, %v45_v19  ;;  %v285_v27 = vpop.f32.mrb[3].mxu0  ;;  %vm132_vm2 = vcmp.gt.f32.partialorder %v122_v22, %v131_v21 }
  0xfa   :  { %vm133_vm3 = vcmp.gt.f32.partialorder %v125_v26, %v131_v21  ;;  %v135_v28 = vmax.f32 %v125_v26, 0.0  ;;  %v136_v29 = vsel %vm132_vm2, %v134_v25, 0.0 }
  0xfc   :  { %v137_v30 = vsel %vm133_vm3, %v135_v28, 0.0 }
  0xfd   :  { %v138_v31 = vpack.c.bf16 %v137_v30, %v136_v29 }
  0xff   :  { %295 = vmatmul.mubr.msk.bf16.vlgmr.msra.gmra.mrb[0].mxu1 %vm171_vm4, %v138_v31 }
 0x1d2   :  { %v209_v33 = vpop.f32.mrb[0].mxu1 }
 0x1d3   :  { %v216_v35 = vadd.f32 %v209_v33, %v29_v32  ;;  %v296_v36 = vpop.f32.mrb[1].mxu1 }
 0x1d4   :  { %v212_v37 = vpop.f32.mrb[2].mxu1 }
 0x1d5   :  { %218 = vst.msk [vmem:[#allocation2] sm:$0xff] %vm26_vm0, %v216_v35  ;;  %v217_v38 = vadd.f32 %v212_v37, %v30_v34  ;;  %v297_v39 = vpop.f32.mrb[3].mxu1 }
 0x1d7   :  { %219 = vst.msk [vmem:[#allocation2 + $0x8] sm:$0xff] %vm26_vm0, %v217_v38 }
 0x1dc   :  { %v223_v41 = vld [vmem:[#allocation2] sm:$0xff] }
 0x1dd   :  { %v232_v42 = vadd.f32 %v263_v40, %v223_v41 }
 0x1de   :  { %v224_v43 = vld [vmem:[#allocation2 + $0x8] sm:$0xff] }
 0x1df   :  { %v233_v44 = vadd.f32 %v263_v40, %v224_v43  ;;  %234 = vst.msk [vmem:[#allocation2] sm:$0xff] %vm26_vm0, %v232_v42 }
 0x1e1   :  { %235 = vst.msk [vmem:[#allocation2 + $0x8] sm:$0xff] %vm26_vm0, %v233_v44 }
 0x1e2   :  { %323 = shalt.err (!%p320_p4)
}
 0x1e3   :  { %s324_s15 = scalar_lea.hbm %s432_s5, 256 }
 0x1e4   :  { %p325_p5 = scmp.ne.s32.totalorder %s432_s5, %s324_s15  ;;  %p328_p6 = scmp.lt.u32.totalorder %s324_s15, %s432_s5 }
 0x1e6   :  { %p330_p7 = pnand %p328_p6, %p325_p5 }
 0x1e8   :  { %333 = shalt.err (!%p330_p7)
}
 0x1e9   :  { %s339_s20 = smov 128   ;;  %s340_s21 = smov 8  }
 0x1ea   :  { %247 = dma.vmem_to_hbm [thread:$0]  %s242_s12, 256, %s432_s5, [#allocation3], %s339_s20, %s339_s20, %s340_s21  }
 0x1eb   :  { %334 = dma.done.wait [#allocation3], 256  }
 0x1ec   :  { %335 = vsyncadd [#allocation3], 4294967040 }
 0x1ed   :  { %251 = vsyncpa [#allocation3], 1 }

</bundles_post_ra>
